<compile_context>
chip_gen: v5e
topology: v5e:2x2
jax: 0.10.0
libtpu: 0.0.40
codegen_flags: <defaults>
</compile_context>

<pallas_src>
import functools

import jax
import jax.numpy as jnp
from jax.experimental import pallas as pl
from jax.experimental.pallas import tpu as pltpu


def _round_up(x, m):
    return (x + m - 1) // m * m


# --------------------------------------------------------------------------
# Fused kernel: x -> [dot -> +bias -> ReLU]* -> dot -> +bias -> out
# --------------------------------------------------------------------------
def _mlp_fused_kernel(x_ref, *refs):
    # refs = (w_0, ..., w_{L-1}, bias_all, o_ref)
    o_ref = refs[-1]
    bias_ref = refs[-2]                      # (L, max_out_pad) f32, VMEM-resident
    num_layers = len(refs) - 2

    h = x_ref[...]                           # (B_TILE, in_pad) bf16
    for i in range(num_layers):
        wt = refs[i][...]                    # (in_pad_i, out_pad_i) bf16, resident
        out_pad_i = wt.shape[1]
        acc = jnp.dot(h, wt, preferred_element_type=jnp.float32)   # MXU, f32 acc
        acc = acc + bias_ref[i:i + 1, :out_pad_i]                  # f32 bias (VPU)
        if i != num_layers - 1:
            h = jnp.maximum(acc, 0.0).astype(jnp.bfloat16)         # ReLU -> bf16 for next MXU
        else:
            o_ref[...] = acc                                       # f32 logits, lane-dense store


def mlp_fused_pallas(x_padded, weights, biases, *, b_tile=256):
    """x_padded: (B_pad, in_pad) bf16 with B_pad % 16 == 0, in_pad % 128 == 0.
    weights: list of (in_pad_i, out_pad_i) bf16, pre-transposed/zero-padded.
    biases:  (num_layers, max_out_pad) f32 (zero-padded rows)."""
    B_pad, in_pad = x_padded.shape
    out_pad = weights[-1].shape[1]
    b_tile = min(b_tile, B_pad)              # both multiples of 16
    grid = (pl.cdiv(B_pad, b_tile),)

    in_specs = [pl.BlockSpec((b_tile, in_pad), lambda i: (i, 0))]
    # Constant block index -> weights/biases DMA'd once, stay VMEM-resident.
    in_specs += [pl.BlockSpec(w.shape, lambda i: (0, 0)) for w in weights]
    in_specs.append(pl.BlockSpec(biases.shape, lambda i: (0, 0)))
    out_specs = pl.BlockSpec((b_tile, out_pad), lambda i: (i, 0))

    flops = 2 * B_pad * sum(w.shape[0] * w.shape[1] for w in weights)
    bytes_accessed = (x_padded.size * 2
                      + sum(w.size * 2 for w in weights)
                      + biases.size * 4
                      + B_pad * out_pad * 4)

    return pl.pallas_call(
        _mlp_fused_kernel,
        out_shape=jax.ShapeDtypeStruct((B_pad, out_pad), jnp.float32),
        grid=grid,
        in_specs=in_specs,
        out_specs=out_specs,
        compiler_params=pltpu.CompilerParams(
            dimension_semantics=("parallel",)),   # v7x: shard batch tiles over 2 TCs
        cost_estimate=pl.CostEstimate(
            flops=flops, transcendentals=0, bytes_accessed=bytes_accessed),
    )(x_padded, *weights, biases)


# --------------------------------------------------------------------------
# Parameter init (torch.nn.Linear default init) + one-time packing
# --------------------------------------------------------------------------
def init_mlp_params(key, input_dim, hidden_layers, output_dim):
    """U(-1/sqrt(fan_in), 1/sqrt(fan_in)) for W and b, like torch.nn.Linear."""
    params = []
    dims = [input_dim] + list(hidden_layers) + [output_dim]
    for i in range(len(dims) - 1):
        fan_in, fan_out = dims[i], dims[i + 1]
        key, kw, kb = jax.random.split(key, 3)
        bound = 1.0 / jnp.sqrt(fan_in)
        w = jax.random.uniform(kw, (fan_out, fan_in), jnp.float32, -bound, bound)
        b = jax.random.uniform(kb, (fan_out,), jnp.float32, -bound, bound)
        params.append((w, b))
    return params


def prepare_params(params, compute_dtype=jnp.bfloat16):
    """One-time packing: transpose W to (in, out), zero-pad both dims to multiples
    of 128, cast to bf16. Pack ALL biases into one (L, max_out_pad) f32 array."""
    weights, out_pads = [], []
    for w, _ in params:
        out_dim, in_dim = w.shape
        in_pad = _round_up(in_dim, 128)
        out_pad = _round_up(out_dim, 128)
        wt = jnp.zeros((in_pad, out_pad), compute_dtype)
        wt = wt.at[:in_dim, :out_dim].set(w.T.astype(compute_dtype))
        weights.append(wt)
        out_pads.append(out_pad)
    max_out_pad = max(out_pads)
    biases = jnp.zeros((len(params), max_out_pad), jnp.float32)
    for i, (_, b) in enumerate(params):
        biases = biases.at[i, :b.shape[0]].set(b.astype(jnp.float32))
    return weights, biases


# --------------------------------------------------------------------------
# Forward: Flatten -> bf16 -> fused MLP kernel -> slice away padding
# --------------------------------------------------------------------------
def mlp_classifier_forward(x, weights, biases, output_dim, *, b_tile=256):
    B = x.shape[0]
    h = x.reshape(B, -1).astype(jnp.bfloat16)   # nn.Flatten (row-major) + bf16 feed
    in_dim = h.shape[1]
    in_pad = weights[0].shape[0]
    pad_b = (-B) % 16                           # bf16 sublane height only
    pad_k = in_pad - in_dim                     # zero K-pad only if not 128-aligned
    if pad_b or pad_k:
        h = jnp.pad(h, ((0, pad_b), (0, pad_k)))
    out_padded = mlp_fused_pallas(h, weights, biases, b_tile=b_tile)
    return out_padded[:B, :output_dim]


if __name__ == "__main__":
    key = jax.random.PRNGKey(0)
    kx, kp = jax.random.split(key)

    # Small shapes: batch=2, channels=4, spatial=16x16 -> input_dim=1024.
    B, C, H, W = 2, 4, 16, 16
    input_dim = C * H * W
    hidden_layers = [32, 32]
    output_dim = 10

    x = jax.random.normal(kx, (B, C, H, W), jnp.float32)
    params = init_mlp_params(kp, input_dim, hidden_layers, output_dim)
    weights, biases = prepare_params(params)    # one-time pack (transpose/pad/bf16)

    out = mlp_classifier_forward(x, weights, biases, output_dim)
    out = jax.block_until_ready(out)

    # Reference in plain JAX mimicking the kernel numerics:
    # bf16-rounded matmul operands, exact f32 accumulation, f32 bias/ReLU.
    h = x.reshape(B, -1).astype(jnp.bfloat16).astype(jnp.float32)
    for i, (w, b) in enumerate(params):
        wt_r = w.T.astype(jnp.bfloat16).astype(jnp.float32)
        h = jnp.dot(h, wt_r, precision=jax.lax.Precision.HIGHEST) + b
        if i != len(params) - 1:
            h = jnp.maximum(h, 0.0).astype(jnp.bfloat16).astype(jnp.float32)

    assert out.shape == (B, output_dim)
    assert jnp.allclose(out, h, atol=2e-3, rtol=2e-3)

    print("KERNEL_OK")
</pallas_src>

<mosaic_0001>
module attributes {stable_mosaic.version = 11 : i64} {
  func.func @_mlp_fused_kernel(%arg0: i32, %arg1: memref<16x1024xbf16, #tpu.memory_space<vmem>>, %arg2: memref<1024x128xbf16, #tpu.memory_space<vmem>>, %arg3: memref<128x128xbf16, #tpu.memory_space<vmem>>, %arg4: memref<128x128xbf16, #tpu.memory_space<vmem>>, %arg5: memref<3x128xf32, #tpu.memory_space<vmem>>, %arg6: memref<16x128xf32, #tpu.memory_space<vmem>>) attributes {dimension_semantics = [#tpu.dimension_semantics<parallel>], iteration_bounds = array<i64: 1>, scalar_prefetch = 0 : i64, scratch_operands = 0 : i64, tpu.core_type = #tpu.core_type<tc>, window_params = [{transform_indices = @transform_0, window_bounds = array<i64: 16, 1024>}, {pipeline_mode = #tpu.pipeline_mode<synchronous>, transform_indices = @transform_1, window_bounds = array<i64: 1024, 128>}, {pipeline_mode = #tpu.pipeline_mode<synchronous>, transform_indices = @transform_2, window_bounds = array<i64: 128, 128>}, {pipeline_mode = #tpu.pipeline_mode<synchronous>, transform_indices = @transform_3, window_bounds = array<i64: 128, 128>}, {pipeline_mode = #tpu.pipeline_mode<synchronous>, transform_indices = @transform_4, window_bounds = array<i64: 3, 128>}, {transform_indices = @transform_5, window_bounds = array<i64: 16, 128>}]} {
    %c0 = arith.constant 0 : index
    %c0_0 = arith.constant 0 : index
    %0 = vector.load %arg1[%c0, %c0_0] : memref<16x1024xbf16, #tpu.memory_space<vmem>>, vector<16x1024xbf16>
    %c0_1 = arith.constant 0 : index
    %c0_2 = arith.constant 0 : index
    %1 = vector.load %arg2[%c0_1, %c0_2] : memref<1024x128xbf16, #tpu.memory_space<vmem>>, vector<1024x128xbf16>
    %cst = arith.constant dense<0.000000e+00> : vector<16x128xf32>
    %2 = tpu.matmul %0, %1, %cst {dimension_numbers = #tpu.dot_dimension_numbers<[1], [0], [0], [1], [0, 0, 1, 1], [], []>} : vector<16x1024xbf16>, vector<1024x128xbf16>, vector<16x128xf32> -> vector<16x128xf32>
    %c0_3 = arith.constant 0 : index
    %c0_4 = arith.constant 0 : index
    %3 = vector.load %arg5[%c0_3, %c0_4] : memref<3x128xf32, #tpu.memory_space<vmem>>, vector<1x128xf32>
    %4 = vector.broadcast %3 : vector<1x128xf32> to vector<16x128xf32>
    %5 = arith.addf %2, %4 : vector<16x128xf32>
    %cst_5 = arith.constant 0.000000e+00 : f32
    %6 = vector.broadcast %cst_5 : f32 to vector<16x128xf32>
    %7 = arith.maximumf %5, %6 : vector<16x128xf32>
    %8 = arith.truncf %7 : vector<16x128xf32> to vector<16x128xbf16>
    %c0_6 = arith.constant 0 : index
    %c0_7 = arith.constant 0 : index
    %9 = vector.load %arg3[%c0_6, %c0_7] : memref<128x128xbf16, #tpu.memory_space<vmem>>, vector<128x128xbf16>
    %cst_8 = arith.constant dense<0.000000e+00> : vector<16x128xf32>
    %10 = tpu.matmul %8, %9, %cst_8 {dimension_numbers = #tpu.dot_dimension_numbers<[1], [0], [0], [1], [0, 0, 1, 1], [], []>} : vector<16x128xbf16>, vector<128x128xbf16>, vector<16x128xf32> -> vector<16x128xf32>
    %c1 = arith.constant 1 : index
    %c0_9 = arith.constant 0 : index
    %11 = vector.load %arg5[%c1, %c0_9] : memref<3x128xf32, #tpu.memory_space<vmem>>, vector<1x128xf32>
    %12 = vector.broadcast %11 : vector<1x128xf32> to vector<16x128xf32>
    %13 = arith.addf %10, %12 : vector<16x128xf32>
    %cst_10 = arith.constant 0.000000e+00 : f32
    %14 = vector.broadcast %cst_10 : f32 to vector<16x128xf32>
    %15 = arith.maximumf %13, %14 : vector<16x128xf32>
    %16 = arith.truncf %15 : vector<16x128xf32> to vector<16x128xbf16>
    %c0_11 = arith.constant 0 : index
    %c0_12 = arith.constant 0 : index
    %17 = vector.load %arg4[%c0_11, %c0_12] : memref<128x128xbf16, #tpu.memory_space<vmem>>, vector<128x128xbf16>
    %cst_13 = arith.constant dense<0.000000e+00> : vector<16x128xf32>
    %18 = tpu.matmul %16, %17, %cst_13 {dimension_numbers = #tpu.dot_dimension_numbers<[1], [0], [0], [1], [0, 0, 1, 1], [], []>} : vector<16x128xbf16>, vector<128x128xbf16>, vector<16x128xf32> -> vector<16x128xf32>
    %c2 = arith.constant 2 : index
    %c0_14 = arith.constant 0 : index
    %19 = vector.load %arg5[%c2, %c0_14] : memref<3x128xf32, #tpu.memory_space<vmem>>, vector<1x128xf32>
    %20 = vector.broadcast %19 : vector<1x128xf32> to vector<16x128xf32>
    %21 = arith.addf %18, %20 : vector<16x128xf32>
    %c0_15 = arith.constant 0 : index
    %c0_16 = arith.constant 0 : index
    %22 = vector.load %arg6[%c0_15, %c0_16] : memref<16x128xf32, #tpu.memory_space<vmem>>, vector<16x128xf32>
    tpu.vector_store %arg6[%c0_15, %c0_16], %21 {strides = array<i32>} : memref<16x128xf32, #tpu.memory_space<vmem>>, vector<16x128xf32>,
    return
  }
  func.func @transform_0(%arg0: i32) -> (i32, i32) {
    %c0_i32 = arith.constant 0 : i32
    %c0_i32_0 = arith.constant 0 : i32
    return %arg0, %c0_i32 : i32, i32
  }
  func.func @transform_1(%arg0: i32) -> (i32, i32) {
    %c0_i32 = arith.constant 0 : i32
    %c0_i32_0 = arith.constant 0 : i32
    %c0_i32_1 = arith.constant 0 : i32
    return %c0_i32, %c0_i32_0 : i32, i32
  }
  func.func @transform_2(%arg0: i32) -> (i32, i32) {
    %c0_i32 = arith.constant 0 : i32
    %c0_i32_0 = arith.constant 0 : i32
    %c0_i32_1 = arith.constant 0 : i32
    return %c0_i32, %c0_i32_0 : i32, i32
  }
  func.func @transform_3(%arg0: i32) -> (i32, i32) {
    %c0_i32 = arith.constant 0 : i32
    %c0_i32_0 = arith.constant 0 : i32
    %c0_i32_1 = arith.constant 0 : i32
    return %c0_i32, %c0_i32_0 : i32, i32
  }
  func.func @transform_4(%arg0: i32) -> (i32, i32) {
    %c0_i32 = arith.constant 0 : i32
    %c0_i32_0 = arith.constant 0 : i32
    %c0_i32_1 = arith.constant 0 : i32
    return %c0_i32, %c0_i32_0 : i32, i32
  }
  func.func @transform_5(%arg0: i32) -> (i32, i32) {
    %c0_i32 = arith.constant 0 : i32
    %c0_i32_0 = arith.constant 0 : i32
    return %arg0, %c0_i32 : i32, i32
  }
}

</mosaic_0001>

<bundles_post_ra>
// kernel: tpu_custom_call.1
= control target key start
LH: loop header
LB: loop body
LE: loop exit
PB: predicated region body
PF: predicated region fallthrough
CT: control target
= control target key end

     0   :  { %10 = vsyncpa [#allocation3], 0  ;;  %s1627_s0 = inlined_call_operand.hbm [shape: bf16[16,1024], index: 0, kind: input, shape index: {}]   ;;  %s1628_s1 = inlined_call_operand.hbm [shape: bf16[1024,128], index: 1, kind: input, shape index: {}]   ;;  %s1629_s2 = inlined_call_operand.hbm [shape: bf16[128,128], index: 2, kind: input, shape index: {}]   ;;  %s1630_s3 = inlined_call_operand.hbm [shape: bf16[128,128], index: 3, kind: input, shape index: {}]   ;;  %s1631_s4 = inlined_call_operand.hbm [shape: f32[3,128], index: 4, kind: input, shape index: {}]   ;;  %s1632_s5 = inlined_call_operand.hbm [shape: f32[16,128], index: 5, kind: output, shape index: {}]  }
   0x1   :  { %11 = vsyncpa [#allocation6], 0 }
   0x2   :  { %12 = vsyncpa [#allocation9], 0  ;;  %s31_s20 = sshll.u32 %s1628_s1, 4  ;;  %s32_s20 = int_to_ptr.hbm [resolvable:$true] %s31_s20 }
   0x3   :  { %13 = vsyncpa [#allocation4], 0  ;;  %s1567_s21 = smov [#allocation5]   ;;  %s57_s25 = sshll.u32 %s1630_s3, 4  ;;  %s58_s25 = int_to_ptr.hbm [resolvable:$true] %s57_s25 }
   0x4   :  { %s33_s22 = sshll.u32 %s1567_s21, 4  ;;  %s1568_s26 = smov 64   ;;  %s34_s22 = int_to_ptr.vmem [resolvable:$true] %s33_s22 }
   0x5   :  { %s1569_s27 = smov 4   ;;  %s1570_s28 = smov [#allocation8]  }
   0x6   :  { %39 = dma.hbm_to_vmem [thread:$0]  %s32_s20, 8192, %s34_s22, [#allocation6], %s1568_s26, %s1568_s26, %s1569_s27  }
   0x7   :  { %s59_s29 = sshll.u32 %s1570_s28, 4  ;;  %s18_s7 = sshll.u32 %s1627_s0, 4  ;;  %s60_s29 = int_to_ptr.vmem [resolvable:$true] %s59_s29  ;;  %s19_s7 = int_to_ptr.hbm [resolvable:$true] %s18_s7 }
   0x8   :  { %65 = dma.hbm_to_vmem [thread:$0]  %s58_s25, 1024, %s60_s29, [#allocation9], %s1568_s26, %s1568_s26, %s1569_s27  }
   0x9   :  { %s1571_s1 = smov [#allocation2]   ;;  %s44_s3 = sshll.u32 %s1629_s2, 4  ;;  %s45_s3 = int_to_ptr.hbm [resolvable:$true] %s44_s3 }
   0xa   :  { %s20_s8 = sshll.u32 %s1571_s1, 4  ;;  %s1572_s11 = smov 512   ;;  %s21_s8 = int_to_ptr.vmem [resolvable:$true] %s20_s8 }
   0xb   :  { %s1573_s12 = smov 32   ;;  %s1574_s13 = smov [#allocation7]  }
   0xc   :  { %26 = dma.hbm_to_vmem [thread:$0]  %s19_s7, 1024, %s21_s8, [#allocation3], %s1572_s11, %s1572_s11, %s1573_s12  }
   0xd   :  { %s46_s14 = sshll.u32 %s1574_s13, 4  ;;  %s71_s0 = sshll.u32 %s1631_s4, 4  ;;  %s47_s14 = int_to_ptr.vmem [resolvable:$true] %s46_s14  ;;  %s72_s0 = int_to_ptr.hbm [resolvable:$true] %s71_s0 }
   0xe   :  { %52 = dma.hbm_to_vmem [thread:$0]  %s45_s3, 1024, %s47_s14, [#allocation6], %s1568_s26, %s1568_s26, %s1569_s27  }
   0xf   :  { %s1575_s17 = smov [#allocation10]  }
  0x10   :  { %s73_s18 = sshll.u32 %s1575_s17, 4  ;;  %s74_s18 = int_to_ptr.vmem [resolvable:$true] %s73_s18 }
  0x11   :  { %76 = dma.hbm_to_vmem [thread:$0]  %s72_s0, 64, %s74_s18, [#allocation9]  }
  0x12   :  { %1559 = dma.done.wait [#allocation3], 1024  }
  0x13   :  { %1560 = vsyncadd [#allocation3], 4294966272 }
  0x14   :  { %1561 = dma.done.wait [#allocation6], 9216  }
  0x15   :  { %1562 = vsyncadd [#allocation6], 4294958080 }
  0x16   :  { %1563 = dma.done.wait [#allocation9], 1088  }
  0x17   :  { %1564 = vsyncadd [#allocation9], 4294966208  ;;  %v1327_v0 = vld [vmem:[#allocation5 + $0x38] sm:$0xff]  ;;  %v1326_v4 = vld [vmem:[#allocation5 + $0x30] sm:$0xff]  ;;  %s1576_s2 = smov [#allocation11]   ;;  %s945_s21 = sshll.u32 %s1632_s5, 4  ;;  %s946_s21 = int_to_ptr.hbm [resolvable:$true] %s945_s21 }
  0x18   :  { %v1335_v1 = vld [vmem:[#allocation5 + $0x78] sm:$0xff]  ;;  %659 = vmatpush.bf16.msra.mxu0 %v1327_v0  ;;  %v1334_v5 = vld [vmem:[#allocation5 + $0x70] sm:$0xff]  ;;  %v1325_v8 = vld [vmem:[#allocation5 + $0x28] sm:$0xff]  ;;  %s943_s4 = sshll.u32 %s1576_s2, 4  ;;  %s1577_s22 = smov 128   ;;  %s944_s4 = int_to_ptr.vmem [resolvable:$true] %s943_s4 }
  0x19   :  { %v1343_v2 = vld [vmem:[#allocation5 + $0xb8] sm:$0xff]  ;;  %673 = vmatpush.bf16.msra.mxu1 %v1335_v1  ;;  %v1342_v6 = vld [vmem:[#allocation5 + $0xb0] sm:$0xff]  ;;  %v1333_v9 = vld [vmem:[#allocation5 + $0x68] sm:$0xff]  ;;  %s1578_s23 = smov 8  }
  0x1a   :  { %v1351_v3 = vld [vmem:[#allocation5 + $0xf8] sm:$0xff]  ;;  %687 = vmatpush.bf16.msra.mxu2 %v1343_v2  ;;  %v1350_v7 = vld [vmem:[#allocation5 + $0xf0] sm:$0xff]  ;;  %v1341_v10 = vld [vmem:[#allocation5 + $0xa8] sm:$0xff] }
  0x1b   :  { %701 = vmatpush.bf16.msra.mxu3 %v1351_v3  ;;  %v1349_v11 = vld [vmem:[#allocation5 + $0xe8] sm:$0xff]  ;;  %v1324_v12 = vld [vmem:[#allocation5 + $0x20] sm:$0xff]  ;;  %v1323_v16 = vld [vmem:[#allocation5 + $0x18] sm:$0xff] }
  0x1c   :  { %660 = vmatpush.bf16.msra.mxu0 %v1326_v4  ;;  %v1332_v13 = vld [vmem:[#allocation5 + $0x60] sm:$0xff]  ;;  %v1331_v17 = vld [vmem:[#allocation5 + $0x58] sm:$0xff]  ;;  %v1322_v20 = vld [vmem:[#allocation5 + $0x10] sm:$0xff] }
  0x1d   :  { %674 = vmatpush.bf16.msra.mxu1 %v1334_v5  ;;  %v1340_v14 = vld [vmem:[#allocation5 + $0xa0] sm:$0xff]  ;;  %v1339_v18 = vld [vmem:[#allocation5 + $0x98] sm:$0xff]  ;;  %v1330_v21 = vld [vmem:[#allocation5 + $0x50] sm:$0xff] }
  0x1e   :  { %688 = vmatpush.bf16.msra.mxu2 %v1342_v6  ;;  %v1348_v15 = vld [vmem:[#allocation5 + $0xe0] sm:$0xff]  ;;  %v1347_v19 = vld [vmem:[#allocation5 + $0xd8] sm:$0xff]  ;;  %v1338_v22 = vld [vmem:[#allocation5 + $0x90] sm:$0xff] }
  0x1f   :  { %702 = vmatpush.bf16.msra.mxu3 %v1350_v7  ;;  %v1346_v23 = vld [vmem:[#allocation5 + $0xd0] sm:$0xff]  ;;  %v1321_v24 = vld [vmem:[#allocation5 + $0x8] sm:$0xff]  ;;  %v1320_v28 = vld [vmem:[#allocation5] sm:$0xff] }
  0x20   :  { %661 = vmatpush.bf16.msra.mxu0 %v1325_v8  ;;  %v1329_v25 = vld [vmem:[#allocation5 + $0x48] sm:$0xff]  ;;  %v1328_v29 = vld [vmem:[#allocation5 + $0x40] sm:$0xff]  ;;  %v1359_v32 = vld [vmem:[#allocation5 + $0x138] sm:$0xff] }
  0x21   :  { %675 = vmatpush.bf16.msra.mxu1 %v1333_v9  ;;  %v1337_v26 = vld [vmem:[#allocation5 + $0x88] sm:$0xff]  ;;  %v1336_v30 = vld [vmem:[#allocation5 + $0x80] sm:$0xff]  ;;  %v1367_v33 = vld [vmem:[#allocation5 + $0x178] sm:$0xff] }
  0x22   :  { %689 = vmatpush.bf16.msra.mxu2 %v1341_v10  ;;  %v1345_v27 = vld [vmem:[#allocation5 + $0xc8] sm:$0xff]  ;;  %v1344_v31 = vld [vmem:[#allocation5 + $0xc0] sm:$0xff]  ;;  %v1375_v42 = vld [vmem:[#allocation5 + $0x1b8] sm:$0xff] }
  0x23   :  { %703 = vmatpush.bf16.msra.mxu3 %v1349_v11  ;;  %v970_v34 = vld [vmem:[#allocation2 + $0x8] sm:$0xf]  ;;  %v962_v36 = vld [vmem:[#allocation2] sm:$0xf]  ;;  %v1313_v38 = vld [vmem:[#allocation2 + $0xc] sm:$0xf] }
  0x24   :  { %662 = vmatpush.bf16.msra.mxu0 %v1324_v12  ;;  %v1317_v35 = vld [vmem:[#allocation2 + $0x24] sm:$0xf0]  ;;  %v1316_v37 = vld [vmem:[#allocation2 + $0x1c] sm:$0xf0]  ;;  %v972_v39 = vld [vmem:[#allocation2 + $0x28] sm:$0xf0] }
  0x25   :  { %676 = vmatpush.bf16.msra.mxu1 %v1332_v13  ;;  %v1312_v40 = vld [vmem:[#allocation2 + $0x4] sm:$0xf]  ;;  %v1383_v43 = vld [vmem:[#allocation5 + $0x1f8] sm:$0xff]  ;;  %v971_v44 = vor.u32 %v1317_v35, %v970_v34  ;;  %v963_v45 = vor.u32 %v1316_v37, %v962_v36  ;;  %v975_v46 = vor.u32 %v1313_v38, %v972_v39  ;;  %v1358_v48 = vld [vmem:[#allocation5 + $0x130] sm:$0xff] }
  0x26   :  { %690 = vmatpush.bf16.msra.mxu2 %v1340_v14  ;;  %v964_v41 = vld [vmem:[#allocation2 + $0x20] sm:$0xf0]  ;;  %v1366_v49 = vld [vmem:[#allocation5 + $0x170] sm:$0xff]  ;;  %v1357_v52 = vld [vmem:[#allocation5 + $0x128] sm:$0xff] }
  0x27   :  { %704 = vmatpush.bf16.msra.mxu3 %v1348_v15  ;;  %v967_v47 = vor.u32 %v1312_v40, %v964_v41  ;;  %v1374_v50 = vld [vmem:[#allocation5 + $0x1b0] sm:$0xff]  ;;  %v1365_v53 = vld [vmem:[#allocation5 + $0x168] sm:$0xff]  ;;  %v1356_v56 = vld [vmem:[#allocation5 + $0x120] sm:$0xff] }
  0x28   :  { %663 = vmatpush.bf16.msra.mxu0 %v1323_v16  ;;  %v1382_v51 = vld [vmem:[#allocation5 + $0x1f0] sm:$0xff]  ;;  %v1373_v54 = vld [vmem:[#allocation5 + $0x1a8] sm:$0xff]  ;;  %v1364_v57 = vld [vmem:[#allocation5 + $0x160] sm:$0xff] }
  0x29   :  { %677 = vmatpush.bf16.msra.mxu1 %v1331_v17  ;;  %v1381_v55 = vld [vmem:[#allocation5 + $0x1e8] sm:$0xff]  ;;  %v1372_v58 = vld [vmem:[#allocation5 + $0x1a0] sm:$0xff]  ;;  %v1355_v60 = vld [vmem:[#allocation5 + $0x118] sm:$0xff] }
  0x2a   :  { %691 = vmatpush.bf16.msra.mxu2 %v1339_v18  ;;  %v1380_v59 = vld [vmem:[#allocation5 + $0x1e0] sm:$0xff]  ;;  %v1363_v61 = vld [vmem:[#allocation5 + $0x158] sm:$0xff]  ;;  %v1354_v0 = vld [vmem:[#allocation5 + $0x110] sm:$0xff] }
  0x2b   :  { %705 = vmatpush.bf16.msra.mxu3 %v1347_v19  ;;  %v1371_v62 = vld [vmem:[#allocation5 + $0x198] sm:$0xff]  ;;  %v1362_v1 = vld [vmem:[#allocation5 + $0x150] sm:$0xff]  ;;  %v1353_v4 = vld [vmem:[#allocation5 + $0x108] sm:$0xff] }
  0x2c   :  { %664 = vmatpush.bf16.msra.mxu0 %v1322_v20  ;;  %v1379_v63 = vld [vmem:[#allocation5 + $0x1d8] sm:$0xff]  ;;  %v1370_v2 = vld [vmem:[#allocation5 + $0x190] sm:$0xff]  ;;  %v1361_v5 = vld [vmem:[#allocation5 + $0x148] sm:$0xff] }
  0x2d   :  { %678 = vmatpush.bf16.msra.mxu1 %v1330_v21  ;;  %v1378_v3 = vld [vmem:[#allocation5 + $0x1d0] sm:$0xff]  ;;  %v1369_v6 = vld [vmem:[#allocation5 + $0x188] sm:$0xff]  ;;  %v1352_v8 = vld [vmem:[#allocation5 + $0x100] sm:$0xff] }
  0x2e   :  { %692 = vmatpush.bf16.msra.mxu2 %v1338_v22  ;;  %v1377_v7 = vld [vmem:[#allocation5 + $0x1c8] sm:$0xff]  ;;  %v1360_v9 = vld [vmem:[#allocation5 + $0x140] sm:$0xff]  ;;  %v978_v12 = vld [vmem:[#allocation2 + $0x10] sm:$0xf] }
  0x2f   :  { %706 = vmatpush.bf16.msra.mxu3 %v1346_v23  ;;  %v1368_v10 = vld [vmem:[#allocation5 + $0x180] sm:$0xff]  ;;  %v1318_v13 = vld [vmem:[#allocation2 + $0x2c] sm:$0xf0]  ;;  %v1314_v14 = vld [vmem:[#allocation2 + $0x14] sm:$0xf] }
  0x30   :  { %665 = vmatpush.bf16.msra.mxu0 %v1321_v24  ;;  %v1376_v11 = vld [vmem:[#allocation5 + $0x1c0] sm:$0xff]  ;;  %v980_v15 = vld [vmem:[#allocation2 + $0x30] sm:$0xf0]  ;;  %v986_v16 = vld [vmem:[#allocation2 + $0x18] sm:$0xf]  ;;  %v979_v20 = vor.u32 %v1318_v13, %v978_v12 }
  0x31   :  { %679 = vmatpush.bf16.msra.mxu1 %v1329_v25  ;;  %v1319_v17 = vld [vmem:[#allocation2 + $0x34] sm:$0xf0]  ;;  %v1315_v18 = vld [vmem:[#allocation2 + $0x1c] sm:$0xf]  ;;  %v983_v21 = vor.u32 %v1314_v14, %v980_v15  ;;  %v1390_v25 = vld [vmem:[#allocation7 + $0x30] sm:$0xff] }
  0x32   :  { %693 = vmatpush.bf16.msra.mxu2 %v1337_v26  ;;  %v988_v19 = vld [vmem:[#allocation2 + $0x38] sm:$0xf0]  ;;  %v987_v22 = vor.u32 %v1319_v17, %v986_v16  ;;  %v1389_v26 = vld [vmem:[#allocation7 + $0x28] sm:$0xff]  ;;  %v1412_v34 = vld [vmem:[#allocation10] ss:$0 sm:$0xff] }
  0x33   :  { %707 = vmatpush.bf16.msra.mxu3 %v1345_v27  ;;  %v991_v23 = vor.u32 %v1315_v18, %v988_v19  ;;  %v1391_v24 = vld [vmem:[#allocation7 + $0x38] sm:$0xff]  ;;  %v1388_v27 = vld [vmem:[#allocation7 + $0x20] sm:$0xff]  ;;  %v1398_v40 = vld [vmem:[#allocation8 + $0x30] sm:$0xff] }
  0x34   :  { %666 = vmatpush.bf16.msra.mxu0 %v1320_v28  ;;  %v1387_v28 = vld [vmem:[#allocation7 + $0x18] sm:$0xff]  ;;  %v1413_v13 = vld [vmem:[#allocation10 + $0x1] ss:$0 sm:$0xff] }
  0x35   :  { %680 = vmatpush.bf16.msra.mxu1 %v1328_v29  ;;  %v1386_v29 = vld [vmem:[#allocation7 + $0x10] sm:$0xff]  ;;  %v1399_v39 = vld [vmem:[#allocation8 + $0x38] sm:$0xff] }
  0x36   :  { %694 = vmatpush.bf16.msra.mxu2 %v1336_v30 }
  0x37   :  { %708 = vmatpush.bf16.msra.mxu3 %v1344_v31  ;;  %667 = vmatmul.bf16.vlgmr.msra.gmra.mxu0 %v963_v45  ;;  %v1385_v31 = vld [vmem:[#allocation7 + $0x8] sm:$0xff] }
  0x38   :  { %715 = vmatpush.bf16.msrb.mxu0 %v1359_v32  ;;  %681 = vmatmul.bf16.vlgmr.msra.gmra.mxu1 %v967_v47 }
  0x39   :  { %729 = vmatpush.bf16.msrb.mxu1 %v1367_v33  ;;  %695 = vmatmul.bf16.vlgmr.msra.gmra.mxu2 %v971_v44  ;;  %v1384_v33 = vld [vmem:[#allocation7] sm:$0xff]  ;;  %v1397_v44 = vld [vmem:[#allocation8 + $0x28] sm:$0xff] }
  0x3a   :  { %743 = vmatpush.bf16.msrb.mxu2 %v1375_v42  ;;  %709 = vmatmul.bf16.vlgmr.msra.gmra.mxu3 %v975_v46 }
  0x3b   :  { %757 = vmatpush.bf16.msrb.mxu3 %v1383_v43 }
  0x3c   :  { %716 = vmatpush.bf16.msrb.mxu0 %v1358_v48 }
  0x3d   :  { %730 = vmatpush.bf16.msrb.mxu1 %v1366_v49 }
  0x3e   :  { %744 = vmatpush.bf16.msrb.mxu2 %v1374_v50  ;;  %v1396_v50 = vld [vmem:[#allocation8 + $0x20] sm:$0xff] }
  0x3f   :  { %758 = vmatpush.bf16.msrb.mxu3 %v1382_v51 }
  0x40   :  { %717 = vmatpush.bf16.msrb.mxu0 %v1357_v52 }
  0x41   :  { %731 = vmatpush.bf16.msrb.mxu1 %v1365_v53 }
  0x42   :  { %745 = vmatpush.bf16.msrb.mxu2 %v1373_v54 }
  0x43   :  { %759 = vmatpush.bf16.msrb.mxu3 %v1381_v55 }
  0x44   :  { %718 = vmatpush.bf16.msrb.mxu0 %v1356_v56 }
  0x45   :  { %732 = vmatpush.bf16.msrb.mxu1 %v1364_v57 }
  0x46   :  { %746 = vmatpush.bf16.msrb.mxu2 %v1372_v58 }
  0x47   :  { %760 = vmatpush.bf16.msrb.mxu3 %v1380_v59 }
  0x48   :  { %719 = vmatpush.bf16.msrb.mxu0 %v1355_v60 }
  0x49   :  { %733 = vmatpush.bf16.msrb.mxu1 %v1363_v61 }
  0x4a   :  { %747 = vmatpush.bf16.msrb.mxu2 %v1371_v62 }
  0x4b   :  { %761 = vmatpush.bf16.msrb.mxu3 %v1379_v63 }
  0x4c   :  { %720 = vmatpush.bf16.msrb.mxu0 %v1354_v0 }
  0x4d   :  { %734 = vmatpush.bf16.msrb.mxu1 %v1362_v1 }
  0x4e   :  { %748 = vmatpush.bf16.msrb.mxu2 %v1370_v2 }
  0x4f   :  { %762 = vmatpush.bf16.msrb.mxu3 %v1378_v3 }
  0x50   :  { %721 = vmatpush.bf16.msrb.mxu0 %v1353_v4 }
  0x51   :  { %735 = vmatpush.bf16.msrb.mxu1 %v1361_v5 }
  0x52   :  { %749 = vmatpush.bf16.msrb.mxu2 %v1369_v6 }
  0x53   :  { %763 = vmatpush.bf16.msrb.mxu3 %v1377_v7 }
  0x54   :  { %722 = vmatpush.bf16.msrb.mxu0 %v1352_v8  ;;  %v1395_v8 = vld [vmem:[#allocation8 + $0x18] sm:$0xff] }
  0x55   :  { %736 = vmatpush.bf16.msrb.mxu1 %v1360_v9  ;;  %v1394_v9 = vld [vmem:[#allocation8 + $0x10] sm:$0xff] }
  0x56   :  { %750 = vmatpush.bf16.msrb.mxu2 %v1368_v10  ;;  %v1393_v10 = vld [vmem:[#allocation8 + $0x8] sm:$0xff] }
  0x57   :  { %764 = vmatpush.bf16.msrb.mxu3 %v1376_v11  ;;  %723 = vmatmul.bf16.vlgmr.msrb.gmra.mxu0 %v979_v20  ;;  %v1392_v11 = vld [vmem:[#allocation8] sm:$0xff] }
  0x58   :  { %737 = vmatmul.bf16.vlgmr.msrb.gmra.mxu1 %v983_v21  ;;  %840 = vmatpush.bf16.msra.mxu0 %v1391_v24  ;;  %v1414_v20 = vld [vmem:[#allocation10 + $0x2] ss:$0 sm:$0xff] }
  0x59   :  { %751 = vmatmul.bf16.vlgmr.msrb.gmra.mxu2 %v987_v22  ;;  %923 = vmatpush.bf16.msra.mxu1 %v1399_v39 }
  0x5a   :  { %765 = vmatmul.bf16.vlgmr.msrb.gmra.mxu3 %v991_v23 }
  0x5c   :  { %841 = vmatpush.bf16.msra.mxu0 %v1390_v25 }
  0x5d   :  { %924 = vmatpush.bf16.msra.mxu1 %v1398_v40 }
  0x60   :  { %842 = vmatpush.bf16.msra.mxu0 %v1389_v26 }
  0x61   :  { %925 = vmatpush.bf16.msra.mxu1 %v1397_v44 }
  0x64   :  { %843 = vmatpush.bf16.msra.mxu0 %v1388_v27 }
  0x65   :  { %926 = vmatpush.bf16.msra.mxu1 %v1396_v50 }
  0x68   :  { %844 = vmatpush.bf16.msra.mxu0 %v1387_v28 }
  0x69   :  { %927 = vmatpush.bf16.msra.mxu1 %v1395_v8 }
  0x6c   :  { %845 = vmatpush.bf16.msra.mxu0 %v1386_v29 }
  0x6d   :  { %928 = vmatpush.bf16.msra.mxu1 %v1394_v9 }
  0x70   :  { %846 = vmatpush.bf16.msra.mxu0 %v1385_v31 }
  0x71   :  { %929 = vmatpush.bf16.msra.mxu1 %v1393_v10 }
  0x74   :  { %847 = vmatpush.bf16.msra.mxu0 %v1384_v33 }
  0x75   :  { %930 = vmatpush.bf16.msra.mxu1 %v1392_v11 }
  0xb4   :  { %v668_v30 = vpop.f32.mrf.mxu0 }
  0xb5   :  { %v682_v32 = vpop.f32.mrf.mxu1  ;;  %v669_v37 = vadd.f32 %v1412_v34, %v668_v30 }
  0xb7   :  { %v683_v42 = vadd.f32 %v682_v32, %v669_v37 }
  0xbc   :  { %v696_v35 = vpop.f32.mrf.mxu2  ;;  %v670_v38 = vpop.f32.mrf.mxu0 }
  0xbd   :  { %v710_v36 = vpop.f32.mrf.mxu3  ;;  %v684_v41 = vpop.f32.mrf.mxu1  ;;  %v671_v43 = vadd.f32 %v1412_v34, %v670_v38  ;;  %v697_v47 = vadd.f32 %v696_v35, %v683_v42 }
  0xbf   :  { %v685_v48 = vadd.f32 %v684_v41, %v671_v43  ;;  %v711_v52 = vadd.f32 %v710_v36, %v697_v47 }
  0xc4   :  { %v698_v45 = vpop.f32.mrf.mxu2 }
  0xc5   :  { %v712_v46 = vpop.f32.mrf.mxu3  ;;  %v699_v53 = vadd.f32 %v698_v45, %v685_v48 }
  0xc7   :  { %v713_v57 = vadd.f32 %v712_v46, %v699_v53 }
  0xd4   :  { %v724_v49 = vpop.f32.mrf.mxu0 }
  0xd5   :  { %v738_v51 = vpop.f32.mrf.mxu1  ;;  %v725_v54 = vadd.f32 %v724_v49, %v711_v52 }
  0xd7   :  { %v739_v59 = vadd.f32 %v738_v51, %v725_v54 }
  0xdc   :  { %v752_v55 = vpop.f32.mrf.mxu2  ;;  %v726_v58 = vpop.f32.mrf.mxu0 }
  0xdd   :  { %v766_v56 = vpop.f32.mrf.mxu3  ;;  %v727_v60 = vadd.f32 %v726_v58, %v713_v57  ;;  %v753_v61 = vadd.f32 %v752_v55, %v739_v59  ;;  %v740_v62 = vpop.f32.mrf.mxu1 }
  0xdf   :  { %v741_v63 = vadd.f32 %v740_v62, %v727_v60  ;;  %v767_v1 = vadd.f32 %v766_v56, %v753_v61 }
  0xe1   :  { %v771_v5 = vmax.f32 %v767_v1, 0.0 }
  0xe4   :  { %v754_v0 = vpop.f32.mrf.mxu2 }
  0xe5   :  { %v755_v2 = vadd.f32 %v754_v0, %v741_v63  ;;  %v768_v3 = vpop.f32.mrf.mxu3 }
  0xe7   :  { %v769_v4 = vadd.f32 %v768_v3, %v755_v2 }
  0xe9   :  { %v772_v6 = vmax.f32 %v769_v4, 0.0 }
  0xeb   :  { %v773_v7 = vpack.c.bf16 %v772_v6, %v771_v5 }
  0xed   :  { %848 = vmatmul.bf16.vlgmr.msra.gmra.mxu0 %v773_v7 }
 0x16a   :  { %v849_v12 = vpop.f32.mrf.mxu0 }
 0x16b   :  { %v850_v14 = vadd.f32 %v1413_v13, %v849_v12 }
 0x16d   :  { %v854_v17 = vmax.f32 %v850_v14, 0.0 }
 0x172   :  { %v851_v15 = vpop.f32.mrf.mxu0 }
 0x173   :  { %v852_v16 = vadd.f32 %v1413_v13, %v851_v15 }
 0x175   :  { %v855_v18 = vmax.f32 %v852_v16, 0.0 }
 0x177   :  { %v856_v19 = vpack.c.bf16 %v855_v18, %v854_v17 }
 0x179   :  { %931 = vmatmul.bf16.vlgmr.msra.gmra.mxu1 %v856_v19 }
 0x1f6   :  { %v932_v21 = vpop.f32.mrf.mxu1 }
 0x1f7   :  { %v933_v22 = vadd.f32 %v1414_v20, %v932_v21 }
 0x1f9   :  { %937 = vst [vmem:[#allocation11] sm:$0xff] %v933_v22 }
 0x1fe   :  { %v934_v23 = vpop.f32.mrf.mxu1 }
 0x1ff   :  { %v935_v24 = vadd.f32 %v1414_v20, %v934_v23 }
 0x201   :  { %938 = vst [vmem:[#allocation11 + $0x8] sm:$0xff] %v935_v24 }
 0x202   :  { %951 = dma.vmem_to_hbm [thread:$0]  %s944_s4, 256, %s946_s21, [#allocation4], %s1577_s22, %s1577_s22, %s1578_s23  }
 0x203   :  { %1565 = dma.done.wait [#allocation4], 256  }
 0x204   :  { %1566 = vsyncadd [#allocation4], 4294967040 }
 0x205   :  { %956 = vsyncpa [#allocation3], 1 }
 0x206   :  { %957 = vsyncpa [#allocation6], 1 }
 0x207   :  { %958 = vsyncpa [#allocation9], 1 }
 0x208   :  { %959 = vsyncpa [#allocation4], 1 }

</bundles_post_ra>
